<compile_context>
chip_gen: v7x
topology: tpu7x:2x2x1
jax: 0.10.0
libtpu: 0.0.40
codegen_flags: <defaults>
</compile_context>

<pallas_src>
import functools

import jax
import jax.numpy as jnp
import numpy as np
from jax.experimental import pallas as pl
from jax.experimental.pallas import tpu as pltpu


def _partial_loss_kernel(x_ref, t_ref, o_ref, *, tile_n, n_valid):
    # x_ref : (tile_n, C)  gathered logits for this tile (VMEM, auto-pipelined)
    # t_ref : (tile_n, 1)  int32 labels for this tile    (VMEM)
    # o_ref : (tile_n, 1)  per-sample picked log-prob (padded rows -> 0)
    pid = pl.program_id(0)

    x = x_ref[...].astype(jnp.float32)                      # (tile_n, C)

    # first softmax over classes (torch.softmax(predict, dim=1))
    m1 = jnp.max(x, axis=-1, keepdims=True)
    e1 = jnp.exp(x - m1)
    p = e1 / jnp.sum(e1, axis=-1, keepdims=True)            # probabilities

    # CrossEntropyLoss == log_softmax + NLL, applied to the probabilities p.
    # p is in [0, 1], so the logsumexp needs no extra max-stabilization pass.
    lse = jnp.log(jnp.sum(jnp.exp(p), axis=-1, keepdims=True))
    logq = p - lse                                           # (tile_n, C)

    n, c = logq.shape
    cols = jax.lax.broadcasted_iota(jnp.int32, (n, c), 1)
    picked = jnp.sum(jnp.where(cols == t_ref[...], logq, 0.0),
                     axis=-1, keepdims=True)                 # (tile_n, 1)

    # zero out padded tail rows so the wrapper can sum everything blindly
    rows = pid * tile_n + jax.lax.broadcasted_iota(jnp.int32, (n, 1), 0)
    o_ref[...] = jnp.where(rows < n_valid, picked, 0.0)


def partial_loss(predict, target, loc, *, tile_n=128):
    """predict: (B, C, H, W) logits; target: (B, H, W) labels; loc = (b, row, col).

    tile_n must be a multiple of 8; 128-512 is a good range for large N.
    """
    b, row, col = loc
    B, C, H, W = predict.shape
    n = b.shape[0]
    if n == 0:
        # torch CrossEntropyLoss(reduction='mean') on an empty batch is NaN.
        return jnp.float32(jnp.nan)

    # Gather only the sampled (N, C) rows directly from the NCHW tensor —
    # no full-tensor transpose.  XLA lowers this to a gather that reads ~N*C
    # elements instead of the whole B*C*H*W array.
    gathered = predict[b, :, row, col]                       # (N, C)
    labels = target[b, row, col].astype(jnp.int32)           # (N,)

    n_pad = pl.cdiv(n, tile_n) * tile_n
    pad = n_pad - n
    gathered = jnp.pad(gathered, ((0, pad), (0, 0)))
    labels = jnp.pad(labels, (0, pad)).reshape(n_pad, 1)
    num_tiles = n_pad // tile_n

    kernel = functools.partial(_partial_loss_kernel, tile_n=tile_n, n_valid=n)

    per_sample = pl.pallas_call(
        kernel,
        out_shape=jax.ShapeDtypeStruct((n_pad, 1), jnp.float32),
        grid_spec=pl.GridSpec(
            grid=(num_tiles,),
            in_specs=[
                pl.BlockSpec((tile_n, C), lambda i: (i, 0)),   # gathered logits
                pl.BlockSpec((tile_n, 1), lambda i: (i, 0)),   # labels
            ],
            out_specs=pl.BlockSpec((tile_n, 1), lambda i: (i, 0)),
        ),
        compiler_params=pltpu.CompilerParams(
            dimension_semantics=("parallel",)),   # independent tiles -> megacore OK
    )(gathered, labels)

    # reduction='mean' and the NLL negation (padded rows contribute 0).
    return -jnp.sum(per_sample) / n


def _reference(predict, target, loc):
    b, row, col = loc
    p = jax.nn.softmax(predict.astype(jnp.float32), axis=1)
    g = p[b, :, row, col]                                     # (N, C)
    labels = target[b, row, col].astype(jnp.int32)
    logq = jax.nn.log_softmax(g, axis=-1)
    return -jnp.mean(jnp.take_along_axis(logq, labels[:, None], axis=-1))


if __name__ == "__main__":
    B, C, H, W = 2, 4, 16, 16
    N = 20  # number of sampled locations (exercises padding / tail masking)

    key = jax.random.PRNGKey(0)
    k_pred, k_tgt, k_b, k_r, k_c = jax.random.split(key, 5)

    predict = jax.random.normal(k_pred, (B, C, H, W), dtype=jnp.float32)
    # target stored as float (typical segmentation masks); .long() cast in forward
    target = jax.random.randint(k_tgt, (B, H, W), 0, C).astype(jnp.float32)

    b_idx = jax.random.randint(k_b, (N,), 0, B)
    row_idx = jax.random.randint(k_r, (N,), 0, H)
    col_idx = jax.random.randint(k_c, (N,), 0, W)
    loc = (b_idx, row_idx, col_idx)

    loss = partial_loss(predict, target, loc)
    jax.block_until_ready(loss)

    ref = _reference(predict, target, loc)
    assert np.allclose(np.asarray(loss), np.asarray(ref), rtol=1e-5, atol=1e-5), (
        loss, ref)

    print("KERNEL_OK")
</pallas_src>

<mosaic_0001>
module attributes {stable_mosaic.version = 11 : i64} {
  func.func @_partial_loss_kernel(%arg0: i32, %arg1: memref<128x4xf32, #tpu.memory_space<vmem>>, %arg2: memref<128x1xi32, #tpu.memory_space<vmem>>, %arg3: memref<128x1xf32, #tpu.memory_space<vmem>>) attributes {dimension_semantics = [#tpu.dimension_semantics<parallel>], iteration_bounds = array<i64: 1>, scalar_prefetch = 0 : i64, scratch_operands = 0 : i64, tpu.core_type = #tpu.core_type<tc>, window_params = [{transform_indices = @transform_0, window_bounds = array<i64: 128, 4>}, {transform_indices = @transform_1, window_bounds = array<i64: 128, 1>}, {transform_indices = @transform_2, window_bounds = array<i64: 128, 1>}]} {
    %c0 = arith.constant 0 : index
    %c0_0 = arith.constant 0 : index
    %0 = vector.load %arg1[%c0, %c0_0] : memref<128x4xf32, #tpu.memory_space<vmem>>, vector<128x4xf32>
    %cst = arith.constant dense<0xFF800000> : vector<128xf32>
    %1 = vector.multi_reduction <maximumf>, %0, %cst [1] : vector<128x4xf32> to vector<128xf32>
    %2 = vector.shape_cast %1 : vector<128xf32> to vector<128x1xf32>
    %3 = vector.broadcast %2 : vector<128x1xf32> to vector<128x4xf32>
    %4 = arith.subf %0, %3 : vector<128x4xf32>
    %5 = math.exp %4 : vector<128x4xf32>
    %cst_1 = arith.constant dense<0.000000e+00> : vector<128xf32>
    %6 = vector.multi_reduction <add>, %5, %cst_1 [1] : vector<128x4xf32> to vector<128xf32>
    %7 = vector.shape_cast %6 : vector<128xf32> to vector<128x1xf32>
    %8 = vector.broadcast %7 : vector<128x1xf32> to vector<128x4xf32>
    %9 = arith.divf %5, %8 : vector<128x4xf32>
    %10 = math.exp %9 : vector<128x4xf32>
    %cst_2 = arith.constant dense<0.000000e+00> : vector<128xf32>
    %11 = vector.multi_reduction <add>, %10, %cst_2 [1] : vector<128x4xf32> to vector<128xf32>
    %12 = vector.shape_cast %11 : vector<128xf32> to vector<128x1xf32>
    %13 = math.log %12 : vector<128x1xf32>
    %14 = vector.broadcast %13 : vector<128x1xf32> to vector<128x4xf32>
    %15 = arith.subf %9, %14 : vector<128x4xf32>
    %16 = tpu.iota {dimensions = array<i32: 1>} : vector<128x4xi32>
    %c0_3 = arith.constant 0 : index
    %c0_4 = arith.constant 0 : index
    %17 = vector.load %arg2[%c0_3, %c0_4] : memref<128x1xi32, #tpu.memory_space<vmem>>, vector<128x1xi32>
    %18 = vector.broadcast %17 : vector<128x1xi32> to vector<128x4xi32>
    %19 = arith.cmpi eq, %16, %18 : vector<128x4xi32>
    %cst_5 = arith.constant 0.000000e+00 : f32
    %20 = vector.broadcast %cst_5 : f32 to vector<128x4xf32>
    %21 = arith.select %19, %15, %20 : vector<128x4xi1>, vector<128x4xf32>
    %cst_6 = arith.constant dense<0.000000e+00> : vector<128xf32>
    %22 = vector.multi_reduction <add>, %21, %cst_6 [1] : vector<128x4xf32> to vector<128xf32>
    %23 = vector.shape_cast %22 : vector<128xf32> to vector<128x1xf32>
    %c128_i32 = arith.constant 128 : i32
    %24 = arith.muli %arg0, %c128_i32 : i32
    %25 = tpu.iota {dimensions = array<i32: 0>} : vector<128x1xi32>
    %26 = vector.broadcast %24 : i32 to vector<128x1xi32>
    %27 = arith.addi %26, %25 : vector<128x1xi32>
    %c20_i32 = arith.constant 20 : i32
    %28 = vector.broadcast %c20_i32 : i32 to vector<128x1xi32>
    %29 = arith.cmpi slt, %27, %28 : vector<128x1xi32>
    %cst_7 = arith.constant 0.000000e+00 : f32
    %30 = vector.broadcast %cst_7 : f32 to vector<128x1xf32>
    %31 = arith.select %29, %23, %30 : vector<128x1xi1>, vector<128x1xf32>
    %c0_8 = arith.constant 0 : index
    %c0_9 = arith.constant 0 : index
    %32 = vector.load %arg3[%c0_8, %c0_9] : memref<128x1xf32, #tpu.memory_space<vmem>>, vector<128x1xf32>
    tpu.vector_store %arg3[%c0_8, %c0_9], %31 {strides = array<i32>} : memref<128x1xf32, #tpu.memory_space<vmem>>, vector<128x1xf32>,
    return
  }
  func.func @transform_0(%arg0: i32) -> (i32, i32) {
    %c0_i32 = arith.constant 0 : i32
    %c0_i32_0 = arith.constant 0 : i32
    return %arg0, %c0_i32 : i32, i32
  }
  func.func @transform_1(%arg0: i32) -> (i32, i32) {
    %c0_i32 = arith.constant 0 : i32
    %c0_i32_0 = arith.constant 0 : i32
    return %arg0, %c0_i32 : i32, i32
  }
  func.func @transform_2(%arg0: i32) -> (i32, i32) {
    %c0_i32 = arith.constant 0 : i32
    %c0_i32_0 = arith.constant 0 : i32
    return %arg0, %c0_i32 : i32, i32
  }
}

</mosaic_0001>

<bundles_post_ra>
// kernel: tpu_custom_call.1
= control target key start
LH: loop header
LB: loop body
LE: loop exit
PB: predicated region body
PF: predicated region fallthrough
CT: control target
= control target key end

     0   :  { %vm27_vm0 = vcmask 31744   ;;  %v594_v6 = vmov 0   ;;  %vm545_vm1 = vcmask 7168   ;;  %v595_v43 = vmov 0.0   ;;  %s713_s0 = inlined_call_operand.vmem [shape: f32[128,4], index: 0, kind: input, shape index: {}]   ;;  %s714_s1 = inlined_call_operand.vmem [shape: s32[128,1], index: 1, kind: input, shape index: {}]   ;;  %s715_s2 = inlined_call_operand.vmem [shape: f32[128,1], index: 2, kind: output, shape index: {}]  }
   0x1   :  { %v13_v0 = vld [vmem:[%s713_s0 + $0x10] sm:$0xff]  ;;  %v12_v1 = vld [vmem:[%s713_s0 + $0x8] sm:$0xff]  ;;  %v11_v2 = vld [vmem:[%s713_s0] sm:$0xff]  ;;  %568 = vset.pattern.permute.xlu1 %v594_v6  ;;  %569 = vset.pattern.permute.xlu0 %v594_v6  ;;  %549 = vst.msk [vmem:[%s715_s2 + $0x18] sm:$0xff] %vm545_vm1, %v595_v43  ;;  %v332_v48 = vlaneseq }
   0x2   :  { %v34_v3 = vsel %vm27_vm0, %v13_v0, -inf  ;;  %v31_v4 = vsel %vm27_vm0, %v12_v1, -inf  ;;  %v28_v5 = vsel %vm27_vm0, %v11_v2, -inf  ;;  %v336_v22 = vld [vmem:[%s714_s1 + $0x10] sm:$0xff]  ;;  %v335_v41 = vld [vmem:[%s714_s1 + $0x8] sm:$0xff]  ;;  %v334_v42 = vld [vmem:[%s714_s1] sm:$0xff] }
   0x3   :  { %35 = vmax.xlane.f32.xlu0 %v34_v3  ;;  %32 = vmax.xlane.f32.xlu1 %v31_v4  ;;  %550 = vst.msk [vmem:[%s715_s2 + $0x20] sm:$0xff] %vm545_vm1, %v595_v43  ;;  %551 = vst.msk [vmem:[%s715_s2 + $0x28] sm:$0xff] %vm545_vm1, %v595_v43  ;;  %v333_v50 = vand.u32 127, %v332_v48  ;;  %v480_v3 = vshrl.u32 %v332_v48, 7 }
   0x4   :  { %552 = vst.msk [vmem:[%s715_s2 + $0x30] sm:$0xff] %vm545_vm1, %v595_v43  ;;  %553 = vst.msk [vmem:[%s715_s2 + $0x38] sm:$0xff] %vm545_vm1, %v595_v43 }
   0x5   :  { %554 = vst.msk [vmem:[%s715_s2 + $0x40] sm:$0xff] %vm545_vm1, %v595_v43  ;;  %555 = vst.msk [vmem:[%s715_s2 + $0x48] sm:$0xff] %vm545_vm1, %v595_v43  ;;  %v482_v4 = vadd.s32 16, %v480_v3 }
   0x6   :  { %556 = vst.msk [vmem:[%s715_s2 + $0x50] sm:$0xff] %vm545_vm1, %v595_v43  ;;  %557 = vst.msk [vmem:[%s715_s2 + $0x58] sm:$0xff] %vm545_vm1, %v595_v43 }
   0x7   :  { %29 = vmax.xlane.f32.xlu0 %v28_v5  ;;  %558 = vst.msk [vmem:[%s715_s2 + $0x60] sm:$0xff] %vm545_vm1, %v595_v43  ;;  %559 = vst.msk [vmem:[%s715_s2 + $0x68] sm:$0xff] %vm545_vm1, %v595_v43  ;;  %vm515_vm5 = vcmp.lt.s32.totalorder %v482_v4, 20 }
   0x8   :  { %560 = vst.msk [vmem:[%s715_s2 + $0x70] sm:$0xff] %vm545_vm1, %v595_v43  ;;  %561 = vst.msk [vmem:[%s715_s2 + $0x78] sm:$0xff] %vm545_vm1, %v595_v43 }
  0x90   :  { %v36_v7 = vpop.xlane.xlu0 %35  ;;  %v33_v8 = vpop.xlane.xlu1 %32 }
  0x91   :  { %v78_v9 = vsub.f32 %v13_v0, %v36_v7  ;;  %v77_v10 = vsub.f32 %v12_v1, %v33_v8 }
  0x93   :  { %v96_v11 = vmul.f32 1.442695, %v78_v9  ;;  %v94_v12 = vmul.f32 1.442695, %v77_v10 }
  0x94   :  { %v30_v13 = vpop.xlane.xlu0 %29 }
  0x95   :  { %570 = vpow2.f32 %v96_v11  ;;  %v76_v14 = vsub.f32 %v11_v2, %v30_v13 }
  0x96   :  { %572 = vpow2.f32 %v94_v12 }
  0x97   :  { %v92_v15 = vmul.f32 1.442695, %v76_v14 }
  0x99   :  { %574 = vpow2.f32 %v92_v15 }
  0x9f   :  { %v571_v16 = vpop.eup %570 }
  0xa0   :  { %v573_v17 = vpop.eup %572  ;;  %v130_v18 = vsel %vm27_vm0, %v571_v16, 0.0 }
  0xa1   :  { %131 = vadd.xlane.f32.xlu1 %v130_v18  ;;  %v127_v19 = vsel %vm27_vm0, %v573_v17, 0.0 }
  0xa3   :  { %v575_v20 = vpop.eup %574 }
  0xa4   :  { %v124_v21 = vsel %vm27_vm0, %v575_v20, 0.0 }
  0xa5   :  { %128 = vadd.xlane.f32.xlu1 %v127_v19  ;;  %125 = vadd.xlane.f32.xlu0 %v124_v21 }
  0xb6   :  { %357 = vperm.xlu1 %568, %v336_v22  }
 0x12e   :  { %v132_v23 = vpop.xlane.xlu1 %131 }
 0x12f   :  { %576 = vrcp.f32 %v132_v23 }
 0x132   :  { %v129_v24 = vpop.xlane.xlu1 %128  ;;  %v126_v25 = vpop.xlane.xlu0 %125 }
 0x133   :  { %578 = vrcp.f32 %v129_v24 }
 0x134   :  { %580 = vrcp.f32 %v126_v25 }
 0x136   :  { %v358_v45 = vpop.permute.xlu1 %357 }
 0x137   :  { %vm400_vm2 = vcmp.eq.s32.totalorder %v333_v50, %v358_v45 }
 0x139   :  { %v577_v26 = vpop.eup %576 }
 0x13a   :  { %v177_v27 = vmul.f32 %v577_v26, %v571_v16 }
 0x13c   :  { %v208_v28 = vmul.f32 1.442695, %v177_v27 }
 0x13d   :  { %v579_v29 = vpop.eup %578 }
 0x13e   :  { %v581_v30 = vpop.eup %580  ;;  %v629_v31 = vmul.f32 %v579_v29, %v573_v17  ;;  %582 = vpow2.f32 %v208_v28 }
 0x13f   :  { %v631_v32 = vmul.f32 %v581_v30, %v575_v20 }
 0x140   :  { %v206_v33 = vmul.f32 1.442695, %v629_v31 }
 0x141   :  { %v204_v34 = vmul.f32 1.442695, %v631_v32 }
 0x142   :  { %584 = vpow2.f32 %v206_v33 }
 0x143   :  { %586 = vpow2.f32 %v204_v34 }
 0x148   :  { %v583_v35 = vpop.eup %582 }
 0x149   :  { %v242_v36 = vsel %vm27_vm0, %v583_v35, 0.0 }
 0x14a   :  { %243 = vadd.xlane.f32.xlu0 %v242_v36 }
 0x14c   :  { %v585_v37 = vpop.eup %584 }
 0x14d   :  { %v587_v38 = vpop.eup %586  ;;  %v239_v39 = vsel %vm27_vm0, %v585_v37, 0.0 }
 0x14e   :  { %240 = vadd.xlane.f32.xlu0 %v239_v39  ;;  %v236_v40 = vsel %vm27_vm0, %v587_v38, 0.0 }
 0x14f   :  { %237 = vadd.xlane.f32.xlu1 %v236_v40 }
 0x160   :  { %354 = vperm.xlu1 %568, %v335_v41  }
 0x164   :  { %351 = vperm.xlu0 %569, %v334_v42  }
 0x1d7   :  { %v244_v44 = vpop.xlane.xlu0 %243 }
 0x1d8   :  { %588 = vlog2.f32 %v244_v44 }
 0x1db   :  { %v241_v46 = vpop.xlane.xlu0 %240 }
 0x1dc   :  { %v238_v47 = vpop.xlane.xlu1 %237  ;;  %590 = vlog2.f32 %v241_v46 }
 0x1dd   :  { %592 = vlog2.f32 %v238_v47 }
 0x1e0   :  { %v355_v57 = vpop.permute.xlu1 %354 }
 0x1e1   :  { %vm399_vm4 = vcmp.eq.s32.totalorder %v333_v50, %v355_v57 }
 0x1e2   :  { %v589_v49 = vpop.eup %588 }
 0x1e3   :  { %v289_v51 = vmul.f32 0.6931472, %v589_v49  ;;  %v352_v54 = vpop.permute.xlu0 %351 }
 0x1e4   :  { %vm398_vm3 = vcmp.eq.s32.totalorder %v333_v50, %v352_v54 }
 0x1e5   :  { %v318_v52 = vsub.f32 %v177_v27, %v289_v51 }
 0x1e6   :  { %v591_v53 = vpop.eup %590 }
 0x1e7   :  { %v593_v55 = vpop.eup %592  ;;  %v287_v56 = vmul.f32 0.6931472, %v591_v53  ;;  %v416_v58 = vsel %vm400_vm2, %v318_v52, 0.0 }
 0x1e8   :  { %v285_v59 = vmul.f32 0.6931472, %v593_v55  ;;  %v436_v60 = vsel %vm27_vm0, %v416_v58, 0.0 }
 0x1e9   :  { %437 = vadd.xlane.f32.xlu1 %v436_v60  ;;  %v317_v61 = vsub.f32 %v629_v31, %v287_v56 }
 0x1ea   :  { %v316_v62 = vsub.f32 %v631_v32, %v285_v59 }
 0x1eb   :  { %v415_v63 = vsel %vm399_vm4, %v317_v61, 0.0 }
 0x1ec   :  { %v433_v0 = vsel %vm27_vm0, %v415_v63, 0.0  ;;  %v414_v1 = vsel %vm398_vm3, %v316_v62, 0.0 }
 0x1ed   :  { %434 = vadd.xlane.f32.xlu1 %v433_v0  ;;  %v430_v2 = vsel %vm27_vm0, %v414_v1, 0.0 }
 0x1ee   :  { %431 = vadd.xlane.f32.xlu0 %v430_v2 }
 0x276   :  { %v438_v5 = vpop.xlane.xlu1 %437 }
 0x277   :  { %v531_v6 = vsel %vm515_vm5, %v438_v5, 0.0 }
 0x278   :  { %548 = vst.msk [vmem:[%s715_s2 + $0x10] sm:$0xff] %vm545_vm1, %v531_v6 }
 0x27a   :  { %v435_v7 = vpop.xlane.xlu1 %434 }
 0x27b   :  { %547 = vst.msk [vmem:[%s715_s2 + $0x8] sm:$0xff] %vm545_vm1, %v435_v7  ;;  %v432_v8 = vpop.xlane.xlu0 %431 }
 0x27c   :  { %546 = vst.msk [vmem:[%s715_s2] sm:$0xff] %vm545_vm1, %v432_v8 }

</bundles_post_ra>
